<compile_context>
chip_gen: v7x
topology: tpu7x:2x2x1
jax: 0.10.0
libtpu: 0.0.40
codegen_flags: <defaults>
</compile_context>

<pallas_src>
import functools
import math

import jax
import jax.numpy as jnp
from jax.experimental import pallas as pl
from jax.experimental.pallas import tpu as pltpu

_LANE = 128


def _round_up(a, m):
    return ((a + m - 1) // m) * m


def _angular_iso_kernel(x_ref, w_ref, lab_ref, sp_ref, neg_ref, *,
                        r_real, r_fake, alpha):
    x = x_ref[...].astype(jnp.float32)          # (TB, D), cast on the VMEM tile
    w = w_ref[...]                              # (1, D) f32, unit-norm (wrapper)
    lab = lab_ref[...]                          # (1, TB) int32, lane-dense

    eps_sq = jnp.float32(1e-24)                 # (1e-12)^2 -> F.normalize eps

    # Row reductions on the MXU: contract the feature (lane) axis of both
    # operands ("q @ k.T" form) so results are lane-dense (1, TB) rows.
    dn = (((1,), (1,)), ((), ()))
    s_xw = jax.lax.dot_general(w, x, dn,
                               preferred_element_type=jnp.float32)      # (1, TB)
    s_xx = jax.lax.dot_general(jnp.ones_like(w), x * x, dn,
                               preferred_element_type=jnp.float32)      # (1, TB)

    # scores = <x, w> / max(||x||, eps); normalized x never materialized.
    scores = s_xw * jax.lax.rsqrt(jnp.maximum(s_xx, eps_sq))            # (1, TB)

    # Label-conditional margin (labels other than 0/1 pass through unchanged).
    adj = jnp.where(lab == 0, jnp.float32(r_real) - scores,
                    jnp.where(lab == 1, scores - jnp.float32(r_fake), scores))

    # Numerically stable softplus(alpha * adj); matches torch.nn.Softplus to
    # <1e-7 (torch switches to identity above threshold=20).
    z = jnp.float32(alpha) * adj
    sp = jnp.maximum(z, 0.0) + jnp.log1p(jnp.exp(-jnp.abs(z)))

    sp_ref[...] = sp            # (1, TB) per-row softplus (mean taken in wrapper)
    neg_ref[...] = -scores      # (1, TB) == -output_scores


def angular_iso_loss(x, labels, center, *, r_real=0.9, r_fake=0.5, alpha=20.0):
    """Returns (loss: scalar f32, -output_scores: (B,) f32) like the torch module."""
    B, D = x.shape
    itemsize = jnp.dtype(x.dtype).itemsize

    # Hoisted once: w = center / max(||center||, eps)  (tiny (1, D) XLA op).
    c32 = center.reshape(1, D).astype(jnp.float32)
    w = c32 / jnp.maximum(jnp.linalg.norm(c32, axis=1, keepdims=True), 1e-12)

    # Lane-dense labels row.
    lab = labels.reshape(1, B).astype(jnp.int32)

    # ---- Row-tile size ------------------------------------------------------
    # Double-buffered per-step working set: x row tile + label row + 2 f32
    # output rows. Target ~24 MiB, with vmem_limit_bytes=32 MiB (safe on
    # v5e/v6e's 128 MiB and on v7x's 64 MiB-per-TensorCore parts).
    row_bytes = D * itemsize + 3 * 4
    vmem_working_set = 24 * 1024 * 1024
    tb_budget = max(_LANE, (vmem_working_set // (2 * row_bytes)) // _LANE * _LANE)
    # Keep >= 4 grid steps when the batch allows it (pipelining + v7x megacore).
    tb_steps = _round_up(pl.cdiv(B, 4), _LANE)
    tb = min(tb_budget, tb_steps)               # multiple of 128 (all dtypes OK)
    if tb >= B:
        tb = B                                  # single full-extent tile (legal)
    grid = (pl.cdiv(B, tb),)

    kernel = functools.partial(_angular_iso_kernel,
                               r_real=float(r_real),
                               r_fake=float(r_fake),
                               alpha=float(alpha))

    sp_row, neg_row = pl.pallas_call(
        kernel,
        out_shape=(
            jax.ShapeDtypeStruct((1, B), jnp.float32),
            jax.ShapeDtypeStruct((1, B), jnp.float32),
        ),
        grid_spec=pltpu.PrefetchScalarGridSpec(
            num_scalar_prefetch=0,
            grid=grid,
            in_specs=[
                pl.BlockSpec((tb, D), lambda i: (i, 0)),   # x row tile (native dtype)
                pl.BlockSpec((1, D), lambda i: (0, 0)),    # unit-norm center, resident
                pl.BlockSpec((1, tb), lambda i: (0, i)),   # labels row, lane-dense
            ],
            out_specs=(
                pl.BlockSpec((1, tb), lambda i: (0, i)),   # softplus row, lane-dense
                pl.BlockSpec((1, tb), lambda i: (0, i)),   # -scores row, lane-dense
            ),
        ),
        compiler_params=pltpu.CompilerParams(
            dimension_semantics=("parallel",),             # batch tiles independent
            vmem_limit_bytes=32 * 1024 * 1024,
        ),
        cost_estimate=pl.CostEstimate(
            flops=5 * B * D,
            transcendentals=3 * B,
            bytes_accessed=B * D * itemsize + 4 * D + 12 * B,
        ),
    )(x, w, lab)

    # Tiny O(B) mean kept in the wrapper so the grid axis stays parallel;
    # out-of-bounds columns of a partial tail tile are dropped by Pallas, so
    # the mean over the (1, B) output is exact without in-kernel masking.
    loss = jnp.mean(sp_row)
    return loss, neg_row[0]


def init_center(key, feat_dim):
    """Deterministic kaiming_uniform_(a=0.25) init for center of shape (1, feat_dim)."""
    a = 0.25
    fan_in = feat_dim
    gain = math.sqrt(2.0 / (1.0 + a * a))
    bound = gain * math.sqrt(3.0 / fan_in)
    return jax.random.uniform(key, (1, feat_dim), jnp.float32,
                              minval=-bound, maxval=bound)


if __name__ == "__main__":
    feat_dim = 2
    batch = 8

    key = jax.random.PRNGKey(0)
    k_x, k_lab, k_c = jax.random.split(key, 3)

    x = jax.random.normal(k_x, (batch, feat_dim), jnp.float32)
    labels = jax.random.randint(k_lab, (batch,), 0, 2, jnp.int32)
    center = init_center(k_c, feat_dim)

    loss, neg_scores = angular_iso_loss(x, labels, center,
                                        r_real=0.9, r_fake=0.5, alpha=20.0)
    jax.block_until_ready((loss, neg_scores))

    # Pure-JAX reference check (mirrors the torch forward exactly).
    eps = 1e-12
    wn = center / jnp.maximum(jnp.linalg.norm(center, axis=1, keepdims=True), eps)
    xn = x / jnp.maximum(jnp.linalg.norm(x, axis=1, keepdims=True), eps)
    s = xn @ wn.T
    adj = jnp.where(labels[:, None] == 0, 0.9 - s,
                    jnp.where(labels[:, None] == 1, s - 0.5, s))
    ref_loss = jnp.mean(jax.nn.softplus(20.0 * adj))
    ref_neg = -s[:, 0]

    assert jnp.allclose(loss, ref_loss, atol=1e-5), (loss, ref_loss)
    assert jnp.allclose(neg_scores, ref_neg, atol=1e-5)
    assert neg_scores.shape == (batch,)

    print("KERNEL_OK")
</pallas_src>

<mosaic_0001>
module attributes {stable_mosaic.version = 11 : i64} {
  func.func @_angular_iso_kernel(%arg0: i32, %arg1: memref<8x2xf32, #tpu.memory_space<vmem>>, %arg2: memref<1x2xf32, #tpu.memory_space<vmem>>, %arg3: memref<1x8xi32, #tpu.memory_space<vmem>>, %arg4: memref<1x8xf32, #tpu.memory_space<vmem>>, %arg5: memref<1x8xf32, #tpu.memory_space<vmem>>) attributes {dimension_semantics = [#tpu.dimension_semantics<parallel>], iteration_bounds = array<i64: 1>, scalar_prefetch = 0 : i64, scratch_operands = 0 : i64, tpu.core_type = #tpu.core_type<tc>, window_params = [{transform_indices = @transform_0, window_bounds = array<i64: 8, 2>}, {pipeline_mode = #tpu.pipeline_mode<synchronous>, transform_indices = @transform_1, window_bounds = array<i64: 1, 2>}, {transform_indices = @transform_2, window_bounds = array<i64: 1, 8>}, {transform_indices = @transform_3, window_bounds = array<i64: 1, 8>}, {transform_indices = @transform_4, window_bounds = array<i64: 1, 8>}]} {
    %c0 = arith.constant 0 : index
    %c0_0 = arith.constant 0 : index
    %0 = vector.load %arg1[%c0, %c0_0] : memref<8x2xf32, #tpu.memory_space<vmem>>, vector<8x2xf32>
    %c0_1 = arith.constant 0 : index
    %c0_2 = arith.constant 0 : index
    %1 = vector.load %arg2[%c0_1, %c0_2] : memref<1x2xf32, #tpu.memory_space<vmem>>, vector<1x2xf32>
    %c0_3 = arith.constant 0 : index
    %c0_4 = arith.constant 0 : index
    %2 = vector.load %arg3[%c0_3, %c0_4] : memref<1x8xi32, #tpu.memory_space<vmem>>, vector<1x8xi32>
    %cst = arith.constant dense<0.000000e+00> : vector<1x8xf32>
    %3 = tpu.matmul %1, %0, %cst {dimension_numbers = #tpu.dot_dimension_numbers<[1], [1], [0], [0], [0, 0, 1, 0], [], []>} : vector<1x2xf32>, vector<8x2xf32>, vector<1x8xf32> -> vector<1x8xf32>
    %cst_5 = arith.constant 1.000000e+00 : f32
    %4 = vector.broadcast %cst_5 : f32 to vector<1x2xf32>
    %5 = arith.mulf %0, %0 : vector<8x2xf32>
    %cst_6 = arith.constant dense<0.000000e+00> : vector<1x8xf32>
    %6 = tpu.matmul %4, %5, %cst_6 {dimension_numbers = #tpu.dot_dimension_numbers<[1], [1], [0], [0], [0, 0, 1, 0], [], []>} : vector<1x2xf32>, vector<8x2xf32>, vector<1x8xf32> -> vector<1x8xf32>
    %cst_7 = arith.constant 1.000000e-24 : f32
    %7 = vector.broadcast %cst_7 : f32 to vector<1x8xf32>
    %8 = arith.maximumf %6, %7 : vector<1x8xf32>
    %9 = math.rsqrt %8 : vector<1x8xf32>
    %10 = arith.mulf %3, %9 : vector<1x8xf32>
    %c0_i32 = arith.constant 0 : i32
    %11 = vector.broadcast %c0_i32 : i32 to vector<1x8xi32>
    %12 = arith.cmpi eq, %2, %11 : vector<1x8xi32>
    %cst_8 = arith.constant 0.899999976 : f32
    %13 = vector.broadcast %cst_8 : f32 to vector<1x8xf32>
    %14 = arith.subf %13, %10 : vector<1x8xf32>
    %c1_i32 = arith.constant 1 : i32
    %15 = vector.broadcast %c1_i32 : i32 to vector<1x8xi32>
    %16 = arith.cmpi eq, %2, %15 : vector<1x8xi32>
    %cst_9 = arith.constant 5.000000e-01 : f32
    %17 = vector.broadcast %cst_9 : f32 to vector<1x8xf32>
    %18 = arith.subf %10, %17 : vector<1x8xf32>
    %19 = arith.select %16, %18, %10 : vector<1x8xi1>, vector<1x8xf32>
    %20 = arith.select %12, %14, %19 : vector<1x8xi1>, vector<1x8xf32>
    %cst_10 = arith.constant 2.000000e+01 : f32
    %21 = vector.broadcast %cst_10 : f32 to vector<1x8xf32>
    %22 = arith.mulf %21, %20 : vector<1x8xf32>
    %cst_11 = arith.constant 0.000000e+00 : f32
    %23 = vector.broadcast %cst_11 : f32 to vector<1x8xf32>
    %24 = arith.maximumf %22, %23 : vector<1x8xf32>
    %25 = math.absf %22 : vector<1x8xf32>
    %cst_12 = arith.constant 0.000000e+00 : f32
    %26 = vector.broadcast %cst_12 : f32 to vector<1x8xf32>
    %27 = arith.subf %26, %25 : vector<1x8xf32>
    %28 = math.exp %27 : vector<1x8xf32>
    %29 = math.log1p %28 : vector<1x8xf32>
    %30 = arith.addf %24, %29 : vector<1x8xf32>
    %c0_13 = arith.constant 0 : index
    %c0_14 = arith.constant 0 : index
    %31 = vector.load %arg4[%c0_13, %c0_14] : memref<1x8xf32, #tpu.memory_space<vmem>>, vector<1x8xf32>
    tpu.vector_store %arg4[%c0_13, %c0_14], %30 {strides = array<i32>} : memref<1x8xf32, #tpu.memory_space<vmem>>, vector<1x8xf32>,
    %cst_15 = arith.constant 0.000000e+00 : f32
    %32 = vector.broadcast %cst_15 : f32 to vector<1x8xf32>
    %33 = arith.subf %32, %10 : vector<1x8xf32>
    %c0_16 = arith.constant 0 : index
    %c0_17 = arith.constant 0 : index
    %34 = vector.load %arg5[%c0_16, %c0_17] : memref<1x8xf32, #tpu.memory_space<vmem>>, vector<1x8xf32>
    tpu.vector_store %arg5[%c0_16, %c0_17], %33 {strides = array<i32>} : memref<1x8xf32, #tpu.memory_space<vmem>>, vector<1x8xf32>,
    return
  }
  func.func @transform_0(%arg0: i32) -> (i32, i32) {
    %c0_i32 = arith.constant 0 : i32
    %c0_i32_0 = arith.constant 0 : i32
    return %arg0, %c0_i32 : i32, i32
  }
  func.func @transform_1(%arg0: i32) -> (i32, i32) {
    %c0_i32 = arith.constant 0 : i32
    %c0_i32_0 = arith.constant 0 : i32
    %c0_i32_1 = arith.constant 0 : i32
    return %c0_i32, %c0_i32_0 : i32, i32
  }
  func.func @transform_2(%arg0: i32) -> (i32, i32) {
    %c0_i32 = arith.constant 0 : i32
    %c0_i32_0 = arith.constant 0 : i32
    return %c0_i32, %arg0 : i32, i32
  }
  func.func @transform_3(%arg0: i32) -> (i32, i32) {
    %c0_i32 = arith.constant 0 : i32
    %c0_i32_0 = arith.constant 0 : i32
    return %c0_i32, %arg0 : i32, i32
  }
  func.func @transform_4(%arg0: i32) -> (i32, i32) {
    %c0_i32 = arith.constant 0 : i32
    %c0_i32_0 = arith.constant 0 : i32
    return %c0_i32, %arg0 : i32, i32
  }
}

</mosaic_0001>

<bundles_post_ra>
// kernel: tpu_custom_call.1
= control target key start
LH: loop header
LB: loop body
LE: loop exit
PB: predicated region body
PF: predicated region fallthrough
CT: control target
= control target key end

     0   :  { %10 = vsyncpa [#allocation3], 0  ;;  %vm21_vm0 = vcmask 15360   ;;  %v310_v1 = vmov 0.0   ;;  %vm311_vm1 = vmmov 0   ;;  %s375_s0 = inlined_call_operand.vmem [shape: f32[8,2], index: 0, kind: input, shape index: {}]   ;;  %s376_s1 = inlined_call_operand.vmem [shape: f32[1,2], index: 1, kind: input, shape index: {}]   ;;  %s377_s2 = inlined_call_operand.vmem [shape: s32[1,8], index: 2, kind: input, shape index: {}]   ;;  %s378_s3 = inlined_call_operand.hbm [shape: f32[1,8], index: 3, kind: output, shape index: {0}]   ;;  %s379_s4 = inlined_call_operand.hbm [shape: f32[1,8], index: 4, kind: output, shape index: {1}]  }
   0x1   :  { %v18_v0 = vld [vmem:[%s375_s0] sm:$0xff]  ;;  %246 = vmatprep.subr.mxu1 %v310_v1  ;;  %248 = vmatprep.mubr.msk.f32.mxu1 %vm311_vm1, %v310_v1 }
   0x2   :  { %v98_v2 = vmul.f32 %v18_v0, %v18_v0 }
   0x3   :  { %11 = vsyncpa [#allocation5], 0  ;;  %241 = vmatprep.subr.mxu0 %v310_v1  ;;  %243 = vmatprep.mubr.msk.f32.mxu0 %vm311_vm1, %v310_v1  ;;  %v19_v3 = vld [vmem:[%s376_s1] sm:$0x1]  ;;  %v312_v4 = vmov 1.0   ;;  %s313_s20 = smov [#allocation4]  }
   0x4   :  { %247 = vmatpush3.xpose.msk.msra.mxu1 %vm21_vm0, %v98_v2  ;;  %242 = vmatpush3.xpose.msk.msra.mxu0 %vm21_vm0, %v18_v0  ;;  %v20_v10 = vld [vmem:[%s377_s2] sm:$0x1]  ;;  %s220_s21 = sshll.u32 %s313_s20, 4  ;;  %vm200_vm3 = vcmask 57344   ;;  %s221_s21 = int_to_ptr.vmem [resolvable:$true] %s220_s21 }
   0x5   :  { %vm180_vm2 = vcmp.eq.s32.totalorder %v20_v10, 1  ;;  %vm178_vm4 = vcmp.eq.s32.totalorder %v20_v10, 0  ;;  %s262_s1 = scalar_lea.vmem %s221_s21, 16  ;;  %s266_s22 = scalar_lea.vmem %s221_s21, 32 }
   0x6   :  { %p263_p0 = scmp.ne.s32.totalorder %s221_s21, %s262_s1  ;;  %p267_p1 = scmp.lt.s32.totalorder %s221_s21, %s221_s21 }
   0x7   :  { %249 = vmatmul.mubr.msk.f32.vlgmr.msra.gmra.mrb[0].mxu1 %vm21_vm0, %v312_v4  ;;  %244 = vmatmul.mubr.msk.f32.vlgmr.msra.gmra.mrb[0].mxu0 %vm21_vm0, %v19_v3  ;;  %p268_p2 = scmp.lt.s32.totalorder %s266_s22, %s262_s1 }
   0x9   :  { %p269_p3 = por %p268_p2, %p267_p1 }
   0xb   :  { %p270_p4 = pnand %p269_p3, %p263_p0 }
  0xda   :  { %v171_v5 = vpop.f32.mrb[0].mxu1  ;;  %v94_v6 = vpop.f32.mrb[0].mxu0 }
  0xdb   :  { %v175_v7 = vmax.f32 %v171_v5, 1e-24  ;;  %v250_v8 = vpop.f32.mrb[1].mxu1  ;;  %v245_v9 = vpop.f32.mrb[1].mxu0 }
  0xdd   :  { %256 = vrsqrt.f32 %v175_v7 }
  0xe7   :  { %v257_v11 = vpop.eup %256 }
  0xe8   :  { %v177_v12 = vmul.f32 %v257_v11, %v94_v6 }
  0xea   :  { %v179_v13 = vsub.f32 0.9, %v177_v12  ;;  %v236_v14 = vadd.f32 -0.5, %v177_v12  ;;  %v202_v15 = vsub.f32 0.0, %v177_v12 }
  0xec   :  { %v182_v16 = vsel %vm180_vm2, %v236_v14, %v177_v12  ;;  %203 = vst.msk [vmem:[#allocation4] sm:$0x1] %vm200_vm3, %v202_v15 }
  0xed   :  { %v183_v17 = vsel %vm178_vm4, %v179_v13, %v182_v16 }
  0xee   :  { %273 = shalt.err (!%p270_p4)
}
  0xef   :  { %s274_s24 = scalar_lea.hbm %s379_s4, 16 }
  0xf0   :  { %p275_p5 = scmp.ne.s32.totalorder %s379_s4, %s274_s24  ;;  %p278_p6 = scmp.lt.u32.totalorder %s274_s24, %s379_s4 }
  0xf2   :  { %p280_p7 = pnand %p278_p6, %p275_p5 }
  0xf4   :  { %283 = shalt.err (!%p280_p7)
}
  0xf5   :  { %223 = dma.vmem_to_hbm [thread:$0]  %s221_s21, 16, %s379_s4, [#allocation5]   ;;  %v184_v18 = vmul.f32 20.0, %v183_v17 }
  0xf6   :  { %s314_s5 = smov [#allocation2]  }
  0xf7   :  { %v186_v19 = vand.u32 2147483647, %v184_v18  ;;  %s210_s6 = sshll.u32 %s314_s5, 4  ;;  %v185_v30 = vmax.f32 %v184_v18, 0.0  ;;  %s211_s6 = int_to_ptr.vmem [resolvable:$true] %s210_s6 }
  0xf8   :  { %s284_s4 = scalar_lea.vmem %s211_s6, 16  ;;  %s288_s7 = scalar_lea.vmem %s211_s6, 32 }
  0xf9   :  { %v187_v20 = vsub.f32 0.0, %v186_v19  ;;  %p285_p8 = scmp.ne.s32.totalorder %s211_s6, %s284_s4  ;;  %p289_p9 = scmp.lt.s32.totalorder %s211_s6, %s211_s6 }
  0xfa   :  { %p290_p10 = scmp.lt.s32.totalorder %s288_s7, %s284_s4 }
  0xfb   :  { %v188_v21 = vmul.f32 1.442695, %v187_v20 }
  0xfc   :  { %p291_p11 = por %p290_p10, %p289_p9 }
  0xfd   :  { %258 = vpow2.f32 %v188_v21 }
  0xfe   :  { %p292_p12 = pnand %p291_p11, %p285_p8 }
 0x107   :  { %v259_v22 = vpop.eup %258 }
 0x108   :  { %v190_v23 = vadd.f32 1.0, %v259_v22  ;;  %v193_v24 = vmul.f32 -0.5, %v259_v22  ;;  %v196_v26 = vand.u32 2147483647, %v259_v22 }
 0x10a   :  { %260 = vlog2.f32 %v190_v23  ;;  %v194_v25 = vadd.f32 1.0, %v193_v24  ;;  %vm197_vm5 = vcmp.lt.f32.partialorder %v196_v26, 0.0004427343 }
 0x10c   :  { %v195_v29 = vmul.f32 %v259_v22, %v194_v25 }
 0x114   :  { %v261_v27 = vpop.eup %260 }
 0x115   :  { %v192_v28 = vmul.f32 0.6931472, %v261_v27 }
 0x117   :  { %v198_v31 = vsel %vm197_vm5, %v195_v29, %v192_v28 }
 0x118   :  { %v199_v32 = vadd.f32 %v198_v31, %v185_v30 }
 0x11a   :  { %201 = vst.msk [vmem:[#allocation2] sm:$0x1] %vm200_vm3, %v199_v32 }
 0x11b   :  { %295 = shalt.err (!%p292_p12)
}
 0x11c   :  { %s296_s10 = scalar_lea.hbm %s378_s3, 16 }
 0x11d   :  { %p297_p13 = scmp.ne.s32.totalorder %s378_s3, %s296_s10  ;;  %p300_p0 = scmp.lt.u32.totalorder %s296_s10, %s378_s3 }
 0x11f   :  { %p302_p1 = pnand %p300_p0, %p297_p13 }
 0x121   :  { %305 = shalt.err (!%p302_p1)
}
 0x122   :  { %213 = dma.vmem_to_hbm [thread:$0]  %s211_s6, 16, %s378_s3, [#allocation3]  }
 0x123   :  { %306 = dma.done.wait [#allocation3], 16  }
 0x124   :  { %307 = vsyncadd [#allocation3], 4294967280 }
 0x125   :  { %308 = dma.done.wait [#allocation5], 16  }
 0x126   :  { %309 = vsyncadd [#allocation5], 4294967280 }
 0x127   :  { %230 = vsyncpa [#allocation3], 1 }
 0x128   :  { %231 = vsyncpa [#allocation5], 1 }

</bundles_post_ra>
